<compile_context>
chip_gen: v7x
topology: tpu7x:2x2x1
jax: 0.10.0
libtpu: 0.0.40
codegen_flags: <defaults>
</compile_context>

<pallas_src>
import jax
import jax.numpy as jnp
from jax.experimental import pallas as pl
from jax.experimental.pallas import tpu as pltpu

_LANE = 128


def _denorm_kernel(x_ref, a_ref, b_ref, o_ref):
    # x_ref / o_ref: (1, C, S_TILE, 128) VMEM blocks.
    # a_ref / b_ref: (C,) float32 per-channel constants resident in SMEM
    #   (scale = std * pixel_scale, shift = mean * pixel_scale).
    c_dim = x_ref.shape[1]
    for c in range(c_dim):                        # unrolled at trace time (C is tiny)
        xc = x_ref[0, c].astype(jnp.float32)      # (S_TILE, 128)
        yc = xc * a_ref[c] + b_ref[c]             # VPU vector-scalar FMA
        o_ref[0, c] = yc.astype(o_ref.dtype)


def _pick_s_tile(s, c, itemsize, n, max_block_bytes=4 * 1024 * 1024):
    """Pick the sublane-tile size (number of 128-lane rows per block).

    Constraints:
      * multiple of the sublane packing granularity (8 f32 / 16 bf16 / 32 i8),
        or the full extent when `s` is smaller than that (always legal),
      * per-block x payload <= max_block_bytes; total buffered VMEM is ~4x
        that (input + output, each double-buffered),
      * keep the grid >= 2 steps when possible so both v7x TCs get work.
    """
    sub = max(8, 32 // max(1, itemsize))
    bytes_per_row = c * _LANE * itemsize
    s_tile = max(1, min(s, max_block_bytes // max(1, bytes_per_row)))
    if s >= sub:
        s_tile = max(sub, (s_tile // sub) * sub)
        if n == 1 and s >= 2 * sub:
            half = -(-s // 2)                     # ceil(s / 2)
            half = -(-half // sub) * sub          # round up to sublane multiple
            s_tile = min(s_tile, half)
    else:
        s_tile = s                                # block == full dim
    return s_tile


def denormalize(x, mean, std, to_pixel_space=True):
    """x: (N, C, H, W); mean/std: per-channel values of length C."""
    N, C, H, W = x.shape
    hw = H * W
    itemsize = jnp.dtype(x.dtype).itemsize
    pixel_scale = 255.0 if to_pixel_space else 1.0

    # out = x * a + b with the pixel-space factor folded into the constants.
    a = jnp.asarray(std, jnp.float32).reshape(C) * pixel_scale
    b = jnp.asarray(mean, jnp.float32).reshape(C) * pixel_scale

    # Lane-dense 4D view: (N, C, S, 128).  Pad H*W up to a multiple of 128 if
    # needed (small XLA-side pad/slice; keeps blocks dense on all generations).
    hw_pad = -(-hw // _LANE) * _LANE
    x3 = x.reshape(N, C, hw)
    if hw_pad != hw:
        x3 = jnp.pad(x3, ((0, 0), (0, 0), (0, hw_pad - hw)))
    S = hw_pad // _LANE
    x4 = x3.reshape(N, C, S, _LANE)

    s_tile = _pick_s_tile(S, C, itemsize, N)
    grid = (N, pl.cdiv(S, s_tile))

    block = (1, C, s_tile, _LANE)
    x_spec = pl.BlockSpec(block, lambda n, t: (n, 0, t, 0))
    out_spec = pl.BlockSpec(block, lambda n, t: (n, 0, t, 0))
    smem_spec = pl.BlockSpec(memory_space=pltpu.MemorySpace.SMEM)

    out4 = pl.pallas_call(
        _denorm_kernel,
        out_shape=jax.ShapeDtypeStruct((N, C, S, _LANE), x.dtype),
        grid_spec=pltpu.PrefetchScalarGridSpec(
            num_scalar_prefetch=0,
            grid=grid,
            in_specs=[x_spec, smem_spec, smem_spec],
            out_specs=out_spec,
        ),
        compiler_params=pltpu.CompilerParams(
            dimension_semantics=("parallel", "parallel"),
            vmem_limit_bytes=32 * 1024 * 1024,
        ),
        cost_estimate=pl.CostEstimate(
            flops=2 * N * C * hw,
            transcendentals=0,
            bytes_accessed=2 * N * C * hw * itemsize,
        ),
    )(x4, a, b)

    out3 = out4.reshape(N, C, hw_pad)
    if hw_pad != hw:
        out3 = out3[:, :, :hw]
    return out3.reshape(N, C, H, W)


class Denormalizer:
    """JAX/Pallas port of the PyTorch Denormalizer module.

    The (input_size, input_size) constant planes of the original module are
    never materialized: denormalization is a per-channel affine, so only (C,)
    scalars are kept.
    """

    def __init__(self, input_size, mean, std, device=None, to_pixel_space=True):
        del input_size, device
        self.to_pixel_space = to_pixel_space
        self.mean = jnp.asarray(mean, jnp.float32)  # (C,)
        self.std = jnp.asarray(std, jnp.float32)    # (C,)

    def __call__(self, x):
        return denormalize(x, self.mean, self.std, self.to_pixel_space)


if __name__ == "__main__":
    key = jax.random.PRNGKey(0)

    # --- Case 1: module-consistent small shapes (ImageNet-style 3-channel). ---
    N, C, H, W = 2, 3, 16, 16
    mean = (0.485, 0.456, 0.406)
    std = (0.229, 0.224, 0.225)

    x = jax.random.normal(key, (N, C, H, W), dtype=jnp.float32)

    denorm = Denormalizer(input_size=H, mean=mean, std=std, to_pixel_space=True)
    out = jax.block_until_ready(denorm(x))

    mean_t = jnp.asarray(mean, jnp.float32).reshape(1, C, 1, 1)
    std_t = jnp.asarray(std, jnp.float32).reshape(1, C, 1, 1)
    ref = (x * std_t + mean_t) * 255.0

    assert out.shape == (N, C, H, W)
    assert jnp.allclose(out, ref, atol=1e-3, rtol=1e-5), float(
        jnp.max(jnp.abs(out - ref))
    )

    # --- Case 2: spatial size not a multiple of 128 (padding path), unit space. ---
    key2 = jax.random.fold_in(key, 1)
    x2 = jax.random.normal(key2, (1, C, 9, 9), dtype=jnp.float32)
    denorm2 = Denormalizer(input_size=9, mean=mean, std=std, to_pixel_space=False)
    out2 = jax.block_until_ready(denorm2(x2))

    mean2 = jnp.asarray(mean, jnp.float32).reshape(1, C, 1, 1)
    std2 = jnp.asarray(std, jnp.float32).reshape(1, C, 1, 1)
    ref2 = x2 * std2 + mean2

    assert out2.shape == (1, C, 9, 9)
    assert jnp.allclose(out2, ref2, atol=1e-5, rtol=1e-5), float(
        jnp.max(jnp.abs(out2 - ref2))
    )

    print("KERNEL_OK")
</pallas_src>

<mosaic_0001>
module attributes {stable_mosaic.version = 11 : i64} {
  func.func @_denorm_kernel(%arg0: i32, %arg1: i32, %arg2: memref<1x3x2x128xf32, #tpu.memory_space<vmem>>, %arg3: memref<3xf32, #tpu.memory_space<smem>>, %arg4: memref<3xf32, #tpu.memory_space<smem>>, %arg5: memref<1x3x2x128xf32, #tpu.memory_space<vmem>>) attributes {dimension_semantics = [#tpu.dimension_semantics<parallel>, #tpu.dimension_semantics<parallel>], iteration_bounds = array<i64: 2, 1>, scalar_prefetch = 0 : i64, scratch_operands = 0 : i64, tpu.core_type = #tpu.core_type<tc>, window_params = [{transform_indices = @transform_0, window_bounds = array<i64: 1, 3, 2, 128>}, {transform_indices = @transform_1, window_bounds = array<i64: 3>}, {transform_indices = @transform_2, window_bounds = array<i64: 3>}, {transform_indices = @transform_3, window_bounds = array<i64: 1, 3, 2, 128>}]} {
    %c0 = arith.constant 0 : index
    %c0_0 = arith.constant 0 : index
    %c0_1 = arith.constant 0 : index
    %c0_2 = arith.constant 0 : index
    %0 = vector.load %arg2[%c0, %c0_0, %c0_1, %c0_2] : memref<1x3x2x128xf32, #tpu.memory_space<vmem>>, vector<1x1x2x128xf32>
    %1 = vector.shape_cast %0 : vector<1x1x2x128xf32> to vector<2x128xf32>
    %c0_3 = arith.constant 0 : index
    %2 = memref.load %arg3[%c0_3] : memref<3xf32, #tpu.memory_space<smem>>
    %3 = vector.broadcast %2 : f32 to vector<2x128xf32>
    %4 = arith.mulf %1, %3 : vector<2x128xf32>
    %c0_4 = arith.constant 0 : index
    %5 = memref.load %arg4[%c0_4] : memref<3xf32, #tpu.memory_space<smem>>
    %6 = vector.broadcast %5 : f32 to vector<2x128xf32>
    %7 = arith.addf %4, %6 : vector<2x128xf32>
    %c0_5 = arith.constant 0 : index
    %c0_6 = arith.constant 0 : index
    %c0_7 = arith.constant 0 : index
    %c0_8 = arith.constant 0 : index
    %8 = vector.load %arg5[%c0_5, %c0_6, %c0_7, %c0_8] : memref<1x3x2x128xf32, #tpu.memory_space<vmem>>, vector<1x1x2x128xf32>
    %9 = vector.shape_cast %8 : vector<1x1x2x128xf32> to vector<2x128xf32>
    %10 = vector.shape_cast %7 : vector<2x128xf32> to vector<1x1x2x128xf32>
    tpu.vector_store %arg5[%c0_5, %c0_6, %c0_7, %c0_8], %10 {strides = array<i32>} : memref<1x3x2x128xf32, #tpu.memory_space<vmem>>, vector<1x1x2x128xf32>,
    %c0_9 = arith.constant 0 : index
    %c1 = arith.constant 1 : index
    %c0_10 = arith.constant 0 : index
    %c0_11 = arith.constant 0 : index
    %11 = vector.load %arg2[%c0_9, %c1, %c0_10, %c0_11] : memref<1x3x2x128xf32, #tpu.memory_space<vmem>>, vector<1x1x2x128xf32>
    %12 = vector.shape_cast %11 : vector<1x1x2x128xf32> to vector<2x128xf32>
    %c1_12 = arith.constant 1 : index
    %13 = memref.load %arg3[%c1_12] : memref<3xf32, #tpu.memory_space<smem>>
    %14 = vector.broadcast %13 : f32 to vector<2x128xf32>
    %15 = arith.mulf %12, %14 : vector<2x128xf32>
    %c1_13 = arith.constant 1 : index
    %16 = memref.load %arg4[%c1_13] : memref<3xf32, #tpu.memory_space<smem>>
    %17 = vector.broadcast %16 : f32 to vector<2x128xf32>
    %18 = arith.addf %15, %17 : vector<2x128xf32>
    %c0_14 = arith.constant 0 : index
    %c1_15 = arith.constant 1 : index
    %c0_16 = arith.constant 0 : index
    %c0_17 = arith.constant 0 : index
    %19 = vector.load %arg5[%c0_14, %c1_15, %c0_16, %c0_17] : memref<1x3x2x128xf32, #tpu.memory_space<vmem>>, vector<1x1x2x128xf32>
    %20 = vector.shape_cast %19 : vector<1x1x2x128xf32> to vector<2x128xf32>
    %21 = vector.shape_cast %18 : vector<2x128xf32> to vector<1x1x2x128xf32>
    tpu.vector_store %arg5[%c0_14, %c1_15, %c0_16, %c0_17], %21 {strides = array<i32>} : memref<1x3x2x128xf32, #tpu.memory_space<vmem>>, vector<1x1x2x128xf32>,
    %c0_18 = arith.constant 0 : index
    %c2 = arith.constant 2 : index
    %c0_19 = arith.constant 0 : index
    %c0_20 = arith.constant 0 : index
    %22 = vector.load %arg2[%c0_18, %c2, %c0_19, %c0_20] : memref<1x3x2x128xf32, #tpu.memory_space<vmem>>, vector<1x1x2x128xf32>
    %23 = vector.shape_cast %22 : vector<1x1x2x128xf32> to vector<2x128xf32>
    %c2_21 = arith.constant 2 : index
    %24 = memref.load %arg3[%c2_21] : memref<3xf32, #tpu.memory_space<smem>>
    %25 = vector.broadcast %24 : f32 to vector<2x128xf32>
    %26 = arith.mulf %23, %25 : vector<2x128xf32>
    %c2_22 = arith.constant 2 : index
    %27 = memref.load %arg4[%c2_22] : memref<3xf32, #tpu.memory_space<smem>>
    %28 = vector.broadcast %27 : f32 to vector<2x128xf32>
    %29 = arith.addf %26, %28 : vector<2x128xf32>
    %c0_23 = arith.constant 0 : index
    %c2_24 = arith.constant 2 : index
    %c0_25 = arith.constant 0 : index
    %c0_26 = arith.constant 0 : index
    %30 = vector.load %arg5[%c0_23, %c2_24, %c0_25, %c0_26] : memref<1x3x2x128xf32, #tpu.memory_space<vmem>>, vector<1x1x2x128xf32>
    %31 = vector.shape_cast %30 : vector<1x1x2x128xf32> to vector<2x128xf32>
    %32 = vector.shape_cast %29 : vector<2x128xf32> to vector<1x1x2x128xf32>
    tpu.vector_store %arg5[%c0_23, %c2_24, %c0_25, %c0_26], %32 {strides = array<i32>} : memref<1x3x2x128xf32, #tpu.memory_space<vmem>>, vector<1x1x2x128xf32>,
    return
  }
  func.func @transform_0(%arg0: i32, %arg1: i32) -> (i32, i32, i32, i32) {
    %c0_i32 = arith.constant 0 : i32
    %c0_i32_0 = arith.constant 0 : i32
    %c0_i32_1 = arith.constant 0 : i32
    return %arg0, %c0_i32, %arg1, %c0_i32_0 : i32, i32, i32, i32
  }
  func.func @transform_1(%arg0: i32, %arg1: i32) -> i32 {
    %c0_i32 = arith.constant 0 : i32
    %c0_i32_0 = arith.constant 0 : i32
    return %c0_i32 : i32
  }
  func.func @transform_2(%arg0: i32, %arg1: i32) -> i32 {
    %c0_i32 = arith.constant 0 : i32
    %c0_i32_0 = arith.constant 0 : i32
    return %c0_i32 : i32
  }
  func.func @transform_3(%arg0: i32, %arg1: i32) -> (i32, i32, i32, i32) {
    %c0_i32 = arith.constant 0 : i32
    %c0_i32_0 = arith.constant 0 : i32
    %c0_i32_1 = arith.constant 0 : i32
    return %arg0, %c0_i32, %arg1, %c0_i32_0 : i32, i32, i32, i32
  }
}

</mosaic_0001>

<bundles_post_ra>
// kernel: tpu_custom_call.1
= control target key start
LH: loop header
LB: loop body
LE: loop exit
PB: predicated region body
PF: predicated region fallthrough
CT: control target
= control target key end

     0   :  { %8 = vsyncpa [#allocation3], 0  ;;  %s890_s0 = inlined_call_operand.hbm [shape: f32[2,3,2,128], index: 0, kind: input, shape index: {}]   ;;  %s891_s1 = inlined_call_operand.vmem [shape: f32[3], index: 1, kind: input, shape index: {}]   ;;  %s892_s2 = inlined_call_operand.vmem [shape: f32[3], index: 2, kind: input, shape index: {}]   ;;  %s893_s3 = inlined_call_operand.hbm [shape: f32[2,3,2,128], index: 3, kind: output, shape index: {}]  }
   0x1   :  { %10 = vsyncpa [#allocation3 + $0x1], 0 }
   0x2   :  { %11 = vsyncpa [#allocation5], 0 }
   0x3   :  { %12 = vsyncpa [#allocation8], 0 }
   0x4   :  { %13 = vsyncpa [#allocation4], 0 }
   0x5   :  { %15 = vsyncpa [#allocation4 + $0x1], 0  ;;  %s675_s12 = smov 0   ;;  %s677_s13 = smov 0  }
   0x6   :  { %s679_s14 = smov 0   ;;  %s681_s15 = smov 0  }
   0x7   :  { %s683_s16 = smov 0   ;;  %s685_s17 = smov 0  }
   0x8 LB: > { %s383_s18 = sadd.s32 4294967295, %s645_s17   ;;  %s384_s19 = sadd.s32 4294967294, %s645_s17   ;;  %s645_s17 = sphi %s685_s17, %s21_s17   ;;  %s641_s16 = sphi %s683_s16, %s919_s16   ;;  %s637_s15 = sphi %s681_s15, %s918_s15   ;;  %s633_s14 = sphi %s679_s14, %s917_s14   ;;  %s629_s13 = sphi %s677_s13, %s916_s13   ;;  %s625_s12 = sphi %s675_s12, %s915_s12  }
   0x9   : > { %s42_s20 = sadd.s32 1, %s633_s14  ;;  %p49_p0 = scmp.ne.s32.totalorder %s633_s14, %s629_s13 }
   0xa   : > { %p50_p1 = scmp.eq.s32.totalorder %s645_s17, 0  ;;  %p55_p2 = scmp.ne.s32.totalorder %s629_s13, %s625_s12 }
   0xb   : > { %p713_p3 = scmp.eq.s32.totalorder %s383_s18, 0  ;;  %p123_p4 = scmp.eq.s32.totalorder %s383_s18, 1 }
   0xc   : > { %p717_p5 = por %p50_p1, %p49_p0  ;;  %p129_p6 = scmp.eq.s32.totalorder %s384_s19, 1 }
   0xd   : > { %s900_s21 = scalar_select %p713_p3, 1, 0 }
   0xe   : > { %p723_p7 = por %p713_p3, %p55_p2  ;;  %p727_p8 = por %p123_p4, %p49_p0 }
   0xf   : > { %p731_p9 = por %p129_p6, %p55_p2  ;;  %p385_p10 = scmp.ge.s32.totalorder %s645_s17, 1 }
  0x10   : > { %s902_s23 = scalar_select %p723_p7, 1, 0 }
  0x11   : > { %s903_s24 = scalar_select %p727_p8, 1, 0 }
  0x12   : > { %s904_s25 = scalar_select %p731_p9, 1, 0 }
  0x13   : > { %p136_p11 = scmp.lt.s32.totalorder %s645_s17, 3  ;;  %s149_s28 = sshll.u32 %s891_s1, 4  ;;  %s150_s28 = int_to_ptr.vmem [resolvable:$true] %s149_s28 }
  0x14   : > { %p437_p0 = scmp.lt.s32.totalorder %s645_s17, 2  ;;  %s160_s5 = sshll.u32 %s892_s2, 4  ;;  %s161_s5 = int_to_ptr.vmem [resolvable:$true] %s160_s5 }
  0x15   : > { %p740_p12 = pnand %p385_p10, %p136_p11  ;;  %s495_s8 = scalar_lea.vmem %s150_s28, 16 }
  0x16   : > { %p753_p2 = pnand %p437_p0, %p717_p5  ;;  %p496_p6 = scmp.ne.s32.totalorder %s150_s28, %s495_s8 }
  0x17   : > { %s905_s29 = scalar_select %p740_p12, 1, 0 }
  0x18   : > { %p420_p1 = pneg %p740_p12  ;;  %p503_p9 = scmp.lt.s32.totalorder %s150_s28, %s150_s28 }
  0x19   : > { %s906_s6 = scalar_select %p753_p2, 1, 0 }
  0x1a   : > { %p759_p4 = pnand %p420_p1, %p713_p3  ;;  %p504_p8 = scmp.lt.s32.totalorder %s495_s8, %s495_s8 }
  0x1c   : > { %p497_p10 = pneg %p759_p4  ;;  %p505_p7 = por %p504_p8, %p503_p9 }
  0x1e   : > { %p498_p11 = pnand %p497_p10, %p496_p6 }
  0x20   : > { %p499_p13 = pneg %p498_p11 }
  0x22   : > { %p506_p5 = pnand %p505_p7, %p499_p13 }
  0x24   : > { %509 = shalt.err (!%p506_p5)
}
  0x25   : > { %s647_s9 = smov [#allocation6]   ;;  %s510_s10 = scalar_lea.vmem %s161_s5, 16 }
  0x26   : > { %423 = dma.vmem_to_smem (!%p759_p4), %s150_s28, 16, %s647_s9, [#allocation5]  }
  0x27   : > { %p511_p0 = scmp.ne.s32.totalorder %s161_s5, %s510_s10  ;;  %p518_p12 = scmp.lt.s32.totalorder %s161_s5, %s161_s5 }
  0x28   : > { %p519_p2 = scmp.lt.s32.totalorder %s510_s10, %s510_s10 }
  0x29   : > { %p513_p1 = pnand %p511_p0, %p497_p10 }
  0x2a   : > { %p520_p6 = por %p519_p2, %p518_p12 }
  0x2b   : > { %p514_p3 = pneg %p513_p1 }
  0x2d   : > { %p521_p11 = pnand %p520_p6, %p514_p3 }
  0x2f   : > { %524 = shalt.err (!%p521_p11)
}
  0x30   : > { %s648_s11 = smov [#allocation7]   ;;  %s33_s18 = sadd.s32 1, %s641_s16 }
  0x31   : > { %426 = dma.vmem_to_smem (!%p759_p4), %s161_s5, 16, %s648_s11, [#allocation8]  }
  0x32   : > { %s171_s19 = sand.u32 1, %s633_s14   ;;  %p35_p7 = scmp.ge.s32.totalorder %s33_s18, 2 }
  0x33   : > { %s404_s22 = smul.u32 6, %s171_s19  ;;  %s788_s9 = scalar_lea.sflag [#allocation3], %s171_s19 }
  0x34   : > { %s921_s18 = smov (%p35_p7, %s33_s18), 0  ;;  %s405_s26 = smul.u32 96, %s641_s16 }
  0x35   : > { %s37_s27 = ssub.s32 %s641_s16, %s921_s18  ;;  %s175_s28 = scalar_lea.vmem [#allocation2], %s404_s22 }
  0x36   : > { %s183_s30 = sshll.u32 %s175_s28, 4  ;;  %p40_p3 = scmp.eq.s32.totalorder %s37_s27, 0  ;;  %s781_s30 = int_to_ptr.vmem [resolvable:$true] %s183_s30 }
  0x37   : > { %s779_s8 = scalar_lea.hbm %s890_s0, %s405_s26  ;;  %p908_p9 = scmp.ne.s32.totalorder %s906_s6, 0 }
  0x38   : > { %s786_s5 = scalar_select %p40_p3, %s633_s14, %s42_s20  }
  0x39   : > { %s525_s10 = scalar_lea.hbm %s779_s8, 96  ;;  %p527_p12 = pneg %p908_p9 }
  0x3a   : > { %p526_p8 = scmp.ne.s32.totalorder %s779_s8, %s525_s10  ;;  %s530_s26 = scalar_lea.hbm %s890_s0, 192 }
  0x3b   : > { %p531_p4 = scmp.lt.u32.totalorder %s779_s8, %s890_s0  ;;  %p532_p10 = scmp.lt.u32.totalorder %s530_s26, %s525_s10 }
  0x3c   : > { %p528_p13 = pnand %p527_p12, %p526_p8  ;;  %p534_p0 = scmp.lt.u32.totalorder %s525_s10, %s779_s8 }
  0x3d   : > { %p533_p5 = por %p532_p10, %p531_p4 }
  0x3e   : > { %p529_p2 = pneg %p528_p13 }
  0x3f   : > { %p535_p1 = por %p534_p0, %p533_p5 }
  0x41   : > { %p536_p6 = pnand %p535_p1, %p529_p2 }
  0x43   : > { %539 = shalt.err (!%p536_p6)
}
  0x44   : > { %s540_s20 = scalar_lea.vmem %s781_s30, 96  ;;  %s649_s19 = smov [#allocation2]  }
  0x45   : > { %p541_p11 = scmp.ne.s32.totalorder %s781_s30, %s540_s20  ;;  %s545_s4 = sshll.u32 %s649_s19, 4  ;;  %s546_s4 = int_to_ptr.vmem [resolvable:$false] %s545_s4 }
  0x46   : > { %s547_s7 = scalar_lea.vmem %s546_s4, 192  ;;  %p548_p8 = scmp.lt.s32.totalorder %s781_s30, %s546_s4 }
  0x47   : > { %p543_p7 = pnand %p541_p11, %p527_p12  ;;  %p549_p13 = scmp.lt.s32.totalorder %s547_s7, %s540_s20 }
  0x49   : > { %p544_p3 = pneg %p543_p7  ;;  %p550_p4 = por %p549_p13, %p548_p8 }
  0x4b   : > { %p551_p10 = pnand %p550_p4, %p544_p3 }
  0x4d   : > { %554 = shalt.err (!%p551_p10)
}
  0x4e   : > { %s650_s10 = smov 32   ;;  %s651_s11 = smov 2  }
  0x4f   : > { %430 = dma.hbm_to_vmem [thread:$0]  (!%p908_p9), %s779_s8, 96, %s781_s30, %s788_s9, %s650_s10, %s650_s10, %s651_s11  }
  0x50   : > { %p909_p12 = scmp.ne.s32.totalorder %s905_s29, 0 }
  0x51   : > { %s819_s22 = sand.u32 (!%p909_p12), 1, %s629_s13   ;;  %p910_p2 = scmp.ne.s32.totalorder (!%p909_p12), %s902_s23, 0 }
  0x52   : > { %195 = sbr.rel (%p909_p12) target bundleno = 127 (0x7f), region = 32  ;;  %s198_s27 = scalar_lea.sflag (!%p909_p12), [#allocation3], %s819_s22 }
  0x53   : > { %s406_s26 = smul.u32 (!%p909_p12), 6, %s819_s22 }
  0x55   : > { %s201_s28 = scalar_lea.vmem (!%p909_p12), [#allocation2], %s406_s26 }
  0x59   : > { %608 = dma.done.wait (%p910_p2), %s198_s27, 96  }
  0x5a   : > { %610 = vsyncadd (%p910_p2), %s198_s27, 4294967200  ;;  %p911_p5 = scmp.ne.s32.totalorder %s900_s21, 0 }
  0x5c   : > { %612 = dma.done.wait (%p911_p5), [#allocation5], 16  }
  0x5d   : > { %614 = vsyncadd (%p911_p5), [#allocation5], 4294967280 }
  0x5e   : > { %616 = dma.done.wait (%p911_p5), [#allocation8], 16  }
  0x5f   : > { %618 = vsyncadd (%p911_p5), [#allocation8], 4294967280 }
  0x60   : > { %214 = sfence }
  0x61   : > { %s234_s29 = sld [smem:[#allocation6]]  ;;  %s394_s30 = sld [smem:[#allocation6 + $0x1]]  ;;  %v233_v0 = vld [vmem:[%s201_s28] sm:$0x3]  ;;  %v393_v2 = vld [vmem:[%s201_s28 + $0x2] sm:$0x3] }
  0x62   : > { %s237_s6 = sld [smem:[#allocation7]]  ;;  %s395_s8 = sld [smem:[#allocation7 + $0x1]]  ;;  %v397_v5 = vld [vmem:[%s201_s28 + $0x4] sm:$0x3] }
  0x63   : > { %s398_s23 = sld [smem:[#allocation6 + $0x2]]  ;;  %s232_s20 = scalar_lea.vmem [#allocation9], %s406_s26 }
  0x64   : > { %s399_s9 = sld [smem:[#allocation7 + $0x2]]  ;;  %s276_s19 = sshll.u32 %s232_s20, 4  ;;  %s836_s19 = int_to_ptr.vmem [resolvable:$true] %s276_s19 }
  0x65   : > { %s407_s21 = smul.u32 96, %s637_s15  ;;  %s262_s15 = scalar_lea.sflag [#allocation4], %s819_s22 }
  0x66   : > { %s555_s11 = scalar_lea.vmem %s836_s19, 96  ;;  %p912_p0 = scmp.ne.s32.totalorder %s903_s24, 0 }
  0x67   : > { %v235_v1 = vstv %s234_s29  ;;  %v244_v6 = vstv %s394_s30  ;;  %s841_s10 = scalar_lea.hbm %s893_s3, %s407_s21  ;;  %p556_p9 = scmp.ne.s32.totalorder %s836_s19, %s555_s11 }
  0x68   : > { %v236_v3 = vmul.f32 %v235_v1, %v233_v0  ;;  %v238_v4 = vstv %s237_s6  ;;  %v245_v8 = vmul.f32 %v393_v2, %v244_v6  ;;  %v247_v9 = vstv %s395_s8  ;;  %s652_s26 = smov [#allocation9]  }
  0x69   : > { %v254_v10 = vstv %s398_s23  ;;  %p557_p1 = pnand %p556_p9, %p912_p0  ;;  %s559_s27 = sshll.u32 %s652_s26, 4  ;;  %s560_s27 = int_to_ptr.vmem [resolvable:$false] %s559_s27 }
  0x6a   : > { %v239_v7 = vadd.f32 %v238_v4, %v236_v3  ;;  %v255_v11 = vmul.f32 %v397_v5, %v254_v10  ;;  %v257_v12 = vstv %s399_s9  ;;  %v248_v13 = vadd.f32 %v247_v9, %v245_v8  ;;  %s561_s28 = scalar_lea.vmem %s560_s27, 192  ;;  %p562_p11 = scmp.lt.s32.totalorder %s836_s19, %s560_s27 }
  0x6b   : > { %p558_p6 = pneg %p557_p1  ;;  %p563_p7 = scmp.lt.s32.totalorder %s561_s28, %s555_s11 }
  0x6c   : > { %240 = vst [vmem:[%s232_s20] sm:$0x3] %v239_v7  ;;  %v258_v14 = vadd.f32 %v257_v12, %v255_v11  ;;  %396 = vst [vmem:[%s232_s20 + $0x2] sm:$0x3] %v248_v13 }
  0x6d   : > { %p564_p3 = por %p563_p7, %p562_p11 }
  0x6e   : > { %400 = vst [vmem:[%s232_s20 + $0x4] sm:$0x3] %v258_v14 }
  0x6f   : > { %p565_p8 = pnand %p564_p3, %p558_p6 }
  0x71   : > { %568 = shalt.err (!%p565_p8)
}
  0x72   : > { %s569_s29 = scalar_lea.hbm %s841_s10, 96  ;;  %s573_s8 = scalar_lea.hbm %s893_s3, 192 }
  0x73   : > { %p570_p13 = scmp.ne.s32.totalorder %s841_s10, %s569_s29  ;;  %p574_p12 = scmp.lt.u32.totalorder %s841_s10, %s893_s3 }
  0x74   : > { %p575_p2 = scmp.lt.u32.totalorder %s573_s8, %s569_s29  ;;  %p577_p9 = scmp.lt.u32.totalorder %s569_s29, %s841_s10 }
  0x75   : > { %p571_p4 = pnand %p570_p13, %p912_p0 }
  0x76   : > { %p576_p5 = por %p575_p2, %p574_p12 }
  0x77   : > { %p572_p10 = pneg %p571_p4 }
  0x78   : > { %p578_p1 = por %p577_p9, %p576_p5 }
  0x7a   : > { %p579_p6 = pnand %p578_p1, %p572_p10 }
  0x7c   : > { %582 = shalt.err (!%p579_p6)
}
  0x7d   : > { %s653_s20 = smov 32   ;;  %s654_s21 = smov 2  }
  0x7e   : > { %418 = dma.vmem_to_hbm [thread:$0]  (%p912_p0), %s836_s19, 96, %s841_s10, %s262_s15, %s653_s20, %s653_s20, %s654_s21  }
  0x7f PF: > { %s291_s4 = sand.u32 1, %s625_s12   ;;  %p913_p11 = scmp.ne.s32.totalorder %s904_s25, 0 }
  0x80   : > { %p914_p7 = scmp.ge.s32.totalorder %s645_s17, 2  ;;  %s292_s7 = scalar_lea.sflag [#allocation4], %s291_s4 }
  0x82   : > { %p432_p3 = pnand %p914_p7, %p913_p11 }
  0x84   : > { %620 = dma.done.wait (!%p432_p3), %s292_s7, 96  }
  0x85   : > { %622 = vsyncadd (!%p432_p3), %s292_s7, 4294967200  ;;  %s21_s17 = sadd.s32 1, %s645_s17   ;;  %s915_s12 = smov %s629_s13 }
  0x86   : > { %p18_p8 = scmp.ge.s32.totalorder %s21_s17, 4   ;;  %s916_s13 = smov %s633_s14 }
  0x87   : > { %s917_s14 = smov %s786_s5  ;;  %s918_s15 = smov %s641_s16 }
  0x88   : > { %s919_s16 = smov %s921_s18  ;;  %20 = sbr.rel (!%p18_p8) target bundleno = 8 (0x8), region = 90 }
  0x8f   :  { %297 = vsyncpa [#allocation3], 1 }
  0x90   :  { %299 = vsyncpa [#allocation3 + $0x1], 1 }
  0x91   :  { %300 = vsyncpa [#allocation4], 1 }
  0x92   :  { %302 = vsyncpa [#allocation4 + $0x1], 1 }
  0x93   :  { %303 = vsyncpa [#allocation5], 1 }
  0x94   :  { %305 = vsyncpa [#allocation5 + $0x1], 1 }
  0x95   :  { %306 = vsyncpa [#allocation8], 1 }

</bundles_post_ra>
